<compile_context>
chip_gen: v5e
topology: v5e:2x2
jax: 0.10.0
libtpu: 0.0.40
codegen_flags: <defaults>
</compile_context>

<pallas_src>
import jax
import jax.numpy as jnp
from jax import lax
from jax.experimental import pallas as pl
from jax.experimental.pallas import tpu as pltpu


def _make_kernel(C, tH, W, nR, has_halo):
    """Kernel body closed over the static tile geometry."""

    def kernel(w_ref, b_ref, *refs):
        # w_ref : SMEM (3, 3) shared filter,  b_ref : SMEM (1, 1) bias
        if has_halo:
            x_ref, above_ref, below_ref, o_ref, xp_ref = refs
        else:
            x_ref, o_ref, xp_ref = refs
            above_ref = below_ref = None

        r = pl.program_id(1)          # row-tile index
        x = x_ref[...]                # (1, C, tH, W) f32

        # ---- assemble the zero-padded (tH+2, W+2) tile in VMEM scratch ----
        zcol = jnp.zeros((1, C, tH + 2, 1), jnp.float32)
        xp_ref[:, :, :, 0:1] = zcol                 # left pad column
        xp_ref[:, :, :, W + 1:W + 2] = zcol         # right pad column
        xp_ref[:, :, 1:tH + 1, 1:W + 1] = x         # interior rows

        if has_halo:
            # neighbour 8-row blocks (clamped at the image border by the
            # index_map); mask to zero when the tile touches the true border.
            top_valid = (r > 0).astype(jnp.float32)
            bot_valid = (r < nR - 1).astype(jnp.float32)
            top = above_ref[:, :, 7:8, :] * top_valid      # row just above tile
            bot = below_ref[:, :, 0:1, :] * bot_valid      # row just below tile
        else:
            top = jnp.zeros((1, C, 1, W), jnp.float32)
            bot = jnp.zeros((1, C, 1, W), jnp.float32)
        xp_ref[:, :, 0:1, 1:W + 1] = top
        xp_ref[:, :, tH + 1:tH + 2, 1:W + 1] = bot

        # ---- channel max of the (unpadded) tile, bias folded in once ------
        sum_b = jnp.max(x, axis=1, keepdims=True) + b_ref[0, 0]   # (1,1,tH,W)

        # ---- 3x3 cross-correlation with the shared filter -----------------
        # init from the centre tap (x already loaded), then the remaining 8
        # taps; hoist the 3 lane-shifted column bands and reuse across rows.
        acc = w_ref[1, 1] * x
        for dj in range(3):
            band = xp_ref[:, :, :, dj:dj + W]        # (1, C, tH+2, W)
            for di in range(3):
                if di == 1 and dj == 1:
                    continue
                acc = acc + w_ref[di, dj] * band[:, :, di:di + tH, :]

        o_ref[...] = jnp.maximum(acc + sum_b, 0.0).astype(o_ref.dtype)

    return kernel


def _choose_tile_rows(C, H, W, budget_bytes):
    """Largest multiple-of-8 row tile dividing H that fits the VMEM budget,
    preferring >=2 row tiles (pipelining / v7x dual-TC) when possible."""
    if H % 8 != 0:
        return H                                     # no clean split
    cands = [t for t in range(8, H + 1, 8) if H % t == 0]
    fitting = [t for t in cands if C * t * W * 4 <= budget_bytes]
    if not fitting:
        return cands[0]                              # best effort: smallest
    multi = [t for t in fitting if H // t >= 2]
    return max(multi) if multi else max(fitting)


def bottleneck_block(x, weight, bias, *, row_tile_budget_bytes=4 * 1024 * 1024):
    """x: (N, C, H, W) f32, weight: (3, 3) f32, bias: scalar f32."""
    N, C, H, W = x.shape
    x = x.astype(jnp.float32)
    w2 = jnp.asarray(weight, jnp.float32).reshape(3, 3)
    b2 = jnp.reshape(jnp.asarray(bias, jnp.float32), (1, 1))

    tH = _choose_tile_rows(C, H, W, row_tile_budget_bytes)
    nR = H // tH
    has_halo = nR > 1

    in_specs = [
        pl.BlockSpec(memory_space=pltpu.MemorySpace.SMEM),        # 3x3 filter
        pl.BlockSpec(memory_space=pltpu.MemorySpace.SMEM),        # bias
        pl.BlockSpec((1, C, tH, W), lambda n, r: (n, 0, r, 0)),   # main row tile
    ]
    inputs = [w2, b2, x]
    if has_halo:
        rpb = tH // 8          # 8-row blocks per row tile (tH is a mult. of 8)
        nb8 = H // 8           # number of 8-row blocks in the image
        in_specs += [
            # 8-row block containing the row just above the tile (clamped)
            pl.BlockSpec((1, C, 8, W),
                         lambda n, r: (n, 0, jnp.maximum(r * rpb - 1, 0), 0)),
            # 8-row block containing the row just below the tile (clamped)
            pl.BlockSpec((1, C, 8, W),
                         lambda n, r: (n, 0, jnp.minimum((r + 1) * rpb, nb8 - 1), 0)),
        ]
        inputs += [x, x]

    kernel = _make_kernel(C, tH, W, nR, has_halo)

    return pl.pallas_call(
        kernel,
        out_shape=jax.ShapeDtypeStruct((N, C, H, W), jnp.float32),
        grid_spec=pltpu.PrefetchScalarGridSpec(
            num_scalar_prefetch=0,
            grid=(N, nR),
            in_specs=in_specs,
            out_specs=pl.BlockSpec((1, C, tH, W), lambda n, r: (n, 0, r, 0)),
            scratch_shapes=[pltpu.VMEM((1, C, tH + 2, W + 2), jnp.float32)],
        ),
        compiler_params=pltpu.CompilerParams(
            dimension_semantics=("parallel", "parallel"),
            vmem_limit_bytes=48 * 1024 * 1024,
        ),
    )(*inputs)


def _reference(x, weight, bias):
    """Pure-JAX reference mirroring the PyTorch module."""
    N, C, H, W = x.shape
    sum_layer = jnp.max(x, axis=1, keepdims=True)
    x_r = x.reshape(N * C, 1, H, W)
    y = lax.conv_general_dilated(
        x_r, weight.reshape(1, 1, 3, 3),
        window_strides=(1, 1), padding=((1, 1), (1, 1)),
        dimension_numbers=("NCHW", "OIHW", "NCHW"))
    y = y + bias
    y = y.reshape(N, C, H, W) + sum_layer
    return jnp.maximum(y, 0.0)


if __name__ == "__main__":
    key = jax.random.PRNGKey(0)
    kx, kw, kb = jax.random.split(key, 3)

    N, C, H, W = 2, 4, 16, 16
    x = jax.random.normal(kx, (N, C, H, W), dtype=jnp.float32)

    # deterministic synthetic parameters for nn.Conv2d(1, 1, 3, padding=1)
    fan_in = 1 * 3 * 3
    bound = 1.0 / (fan_in ** 0.5)
    weight = jax.random.uniform(kw, (3, 3), jnp.float32, -bound, bound)
    bias = jax.random.uniform(kb, (), jnp.float32, -bound, bound)

    out = bottleneck_block(x, weight, bias)
    out = jax.block_until_ready(out)

    ref = _reference(x, weight, bias)
    assert out.shape == (N, C, H, W)
    assert jnp.allclose(out, ref, atol=1e-5, rtol=1e-5), "mismatch vs reference"

    print("KERNEL_OK")
</pallas_src>

<mosaic_0001>
module attributes {stable_mosaic.version = 11 : i64} {
  func.func @kernel(%arg0: i32, %arg1: i32, %arg2: memref<3x3xf32, #tpu.memory_space<smem>>, %arg3: memref<1x1xf32, #tpu.memory_space<smem>>, %arg4: memref<1x4x8x16xf32, #tpu.memory_space<vmem>>, %arg5: memref<1x4x8x16xf32, #tpu.memory_space<vmem>>, %arg6: memref<1x4x8x16xf32, #tpu.memory_space<vmem>>, %arg7: memref<1x4x8x16xf32, #tpu.memory_space<vmem>>, %arg8: memref<1x4x10x18xf32, #tpu.memory_space<vmem>>) attributes {dimension_semantics = [#tpu.dimension_semantics<parallel>, #tpu.dimension_semantics<parallel>], iteration_bounds = array<i64: 2, 2>, scalar_prefetch = 0 : i64, scratch_operands = 1 : i64, tpu.core_type = #tpu.core_type<tc>, window_params = [{transform_indices = @transform_0, window_bounds = array<i64: 3, 3>}, {transform_indices = @transform_1, window_bounds = array<i64: 1, 1>}, {transform_indices = @transform_2, window_bounds = array<i64: 1, 4, 8, 16>}, {transform_indices = @transform_3, window_bounds = array<i64: 1, 4, 8, 16>}, {transform_indices = @transform_4, window_bounds = array<i64: 1, 4, 8, 16>}, {transform_indices = @transform_5, window_bounds = array<i64: 1, 4, 8, 16>}]} {
    %c0 = arith.constant 0 : index
    %c0_0 = arith.constant 0 : index
    %c0_1 = arith.constant 0 : index
    %c0_2 = arith.constant 0 : index
    %0 = vector.load %arg4[%c0, %c0_0, %c0_1, %c0_2] : memref<1x4x8x16xf32, #tpu.memory_space<vmem>>, vector<1x4x8x16xf32>
    %cst = arith.constant 0.000000e+00 : f32
    %1 = vector.broadcast %cst : f32 to vector<1x4x10x1xf32>
    %c0_3 = arith.constant 0 : index
    %c0_4 = arith.constant 0 : index
    %c0_5 = arith.constant 0 : index
    %c0_6 = arith.constant 0 : index
    %2 = vector.load %arg8[%c0_3, %c0_4, %c0_5, %c0_6] : memref<1x4x10x18xf32, #tpu.memory_space<vmem>>, vector<1x4x10x1xf32>
    tpu.vector_store %arg8[%c0_3, %c0_4, %c0_5, %c0_6], %1 {strides = array<i32>} : memref<1x4x10x18xf32, #tpu.memory_space<vmem>>, vector<1x4x10x1xf32>,
    %c0_7 = arith.constant 0 : index
    %c0_8 = arith.constant 0 : index
    %c0_9 = arith.constant 0 : index
    %c17 = arith.constant 17 : index
    %3 = vector.load %arg8[%c0_7, %c0_8, %c0_9, %c17] : memref<1x4x10x18xf32, #tpu.memory_space<vmem>>, vector<1x4x10x1xf32>
    tpu.vector_store %arg8[%c0_7, %c0_8, %c0_9, %c17], %1 {strides = array<i32>} : memref<1x4x10x18xf32, #tpu.memory_space<vmem>>, vector<1x4x10x1xf32>,
    %c0_10 = arith.constant 0 : index
    %c0_11 = arith.constant 0 : index
    %c1 = arith.constant 1 : index
    %c1_12 = arith.constant 1 : index
    %4 = vector.load %arg8[%c0_10, %c0_11, %c1, %c1_12] : memref<1x4x10x18xf32, #tpu.memory_space<vmem>>, vector<1x4x8x16xf32>
    tpu.vector_store %arg8[%c0_10, %c0_11, %c1, %c1_12], %0 {strides = array<i32>} : memref<1x4x10x18xf32, #tpu.memory_space<vmem>>, vector<1x4x8x16xf32>,
    %c0_i32 = arith.constant 0 : i32
    %5 = arith.cmpi sgt, %arg1, %c0_i32 : i32
    %6 = arith.extui %5 : i1 to i32
    %7 = arith.sitofp %6 : i32 to f32
    %c1_i32 = arith.constant 1 : i32
    %8 = arith.cmpi slt, %arg1, %c1_i32 : i32
    %9 = arith.extui %8 : i1 to i32
    %10 = arith.sitofp %9 : i32 to f32
    %c0_13 = arith.constant 0 : index
    %c0_14 = arith.constant 0 : index
    %c7 = arith.constant 7 : index
    %c0_15 = arith.constant 0 : index
    %11 = vector.load %arg5[%c0_13, %c0_14, %c7, %c0_15] : memref<1x4x8x16xf32, #tpu.memory_space<vmem>>, vector<1x4x1x16xf32>
    %12 = vector.broadcast %7 : f32 to vector<1x4x1x16xf32>
    %13 = arith.mulf %11, %12 : vector<1x4x1x16xf32>
    %c0_16 = arith.constant 0 : index
    %c0_17 = arith.constant 0 : index
    %c0_18 = arith.constant 0 : index
    %c0_19 = arith.constant 0 : index
    %14 = vector.load %arg6[%c0_16, %c0_17, %c0_18, %c0_19] : memref<1x4x8x16xf32, #tpu.memory_space<vmem>>, vector<1x4x1x16xf32>
    %15 = vector.broadcast %10 : f32 to vector<1x4x1x16xf32>
    %16 = arith.mulf %14, %15 : vector<1x4x1x16xf32>
    %c0_20 = arith.constant 0 : index
    %c0_21 = arith.constant 0 : index
    %c0_22 = arith.constant 0 : index
    %c1_23 = arith.constant 1 : index
    %17 = vector.load %arg8[%c0_20, %c0_21, %c0_22, %c1_23] : memref<1x4x10x18xf32, #tpu.memory_space<vmem>>, vector<1x4x1x16xf32>
    tpu.vector_store %arg8[%c0_20, %c0_21, %c0_22, %c1_23], %13 {strides = array<i32>} : memref<1x4x10x18xf32, #tpu.memory_space<vmem>>, vector<1x4x1x16xf32>,
    %c0_24 = arith.constant 0 : index
    %c0_25 = arith.constant 0 : index
    %c9 = arith.constant 9 : index
    %c1_26 = arith.constant 1 : index
    %18 = vector.load %arg8[%c0_24, %c0_25, %c9, %c1_26] : memref<1x4x10x18xf32, #tpu.memory_space<vmem>>, vector<1x4x1x16xf32>
    tpu.vector_store %arg8[%c0_24, %c0_25, %c9, %c1_26], %16 {strides = array<i32>} : memref<1x4x10x18xf32, #tpu.memory_space<vmem>>, vector<1x4x1x16xf32>,
    %cst_27 = arith.constant dense<0xFF800000> : vector<1x8x16xf32>
    %19 = vector.multi_reduction <maximumf>, %0, %cst_27 [1] : vector<1x4x8x16xf32> to vector<1x8x16xf32>
    %20 = vector.shape_cast %19 : vector<1x8x16xf32> to vector<1x1x8x16xf32>
    %c0_28 = arith.constant 0 : index
    %c0_29 = arith.constant 0 : index
    %21 = memref.load %arg3[%c0_28, %c0_29] : memref<1x1xf32, #tpu.memory_space<smem>>
    %22 = vector.broadcast %21 : f32 to vector<1x1x8x16xf32>
    %23 = arith.addf %20, %22 : vector<1x1x8x16xf32>
    %c1_30 = arith.constant 1 : index
    %c1_31 = arith.constant 1 : index
    %24 = memref.load %arg2[%c1_30, %c1_31] : memref<3x3xf32, #tpu.memory_space<smem>>
    %25 = vector.broadcast %24 : f32 to vector<1x4x8x16xf32>
    %26 = arith.mulf %25, %0 : vector<1x4x8x16xf32>
    %c0_32 = arith.constant 0 : index
    %c0_33 = arith.constant 0 : index
    %c0_34 = arith.constant 0 : index
    %c0_35 = arith.constant 0 : index
    %27 = vector.load %arg8[%c0_32, %c0_33, %c0_34, %c0_35] : memref<1x4x10x18xf32, #tpu.memory_space<vmem>>, vector<1x4x10x16xf32>
    %c0_36 = arith.constant 0 : index
    %c0_37 = arith.constant 0 : index
    %28 = memref.load %arg2[%c0_36, %c0_37] : memref<3x3xf32, #tpu.memory_space<smem>>
    %29 = vector.extract_strided_slice %27 {offsets = [0, 0, 0, 0], sizes = [1, 4, 8, 16], strides = [1, 1, 1, 1]} : vector<1x4x10x16xf32> to vector<1x4x8x16xf32>
    %30 = vector.broadcast %28 : f32 to vector<1x4x8x16xf32>
    %31 = arith.mulf %30, %29 : vector<1x4x8x16xf32>
    %32 = arith.addf %26, %31 : vector<1x4x8x16xf32>
    %c1_38 = arith.constant 1 : index
    %c0_39 = arith.constant 0 : index
    %33 = memref.load %arg2[%c1_38, %c0_39] : memref<3x3xf32, #tpu.memory_space<smem>>
    %34 = vector.extract_strided_slice %27 {offsets = [0, 0, 1, 0], sizes = [1, 4, 8, 16], strides = [1, 1, 1, 1]} : vector<1x4x10x16xf32> to vector<1x4x8x16xf32>
    %35 = vector.broadcast %33 : f32 to vector<1x4x8x16xf32>
    %36 = arith.mulf %35, %34 : vector<1x4x8x16xf32>
    %37 = arith.addf %32, %36 : vector<1x4x8x16xf32>
    %c2 = arith.constant 2 : index
    %c0_40 = arith.constant 0 : index
    %38 = memref.load %arg2[%c2, %c0_40] : memref<3x3xf32, #tpu.memory_space<smem>>
    %39 = vector.extract_strided_slice %27 {offsets = [0, 0, 2, 0], sizes = [1, 4, 8, 16], strides = [1, 1, 1, 1]} : vector<1x4x10x16xf32> to vector<1x4x8x16xf32>
    %40 = vector.broadcast %38 : f32 to vector<1x4x8x16xf32>
    %41 = arith.mulf %40, %39 : vector<1x4x8x16xf32>
    %42 = arith.addf %37, %41 : vector<1x4x8x16xf32>
    %c0_41 = arith.constant 0 : index
    %c0_42 = arith.constant 0 : index
    %c0_43 = arith.constant 0 : index
    %c1_44 = arith.constant 1 : index
    %43 = vector.load %arg8[%c0_41, %c0_42, %c0_43, %c1_44] : memref<1x4x10x18xf32, #tpu.memory_space<vmem>>, vector<1x4x10x16xf32>
    %c0_45 = arith.constant 0 : index
    %c1_46 = arith.constant 1 : index
    %44 = memref.load %arg2[%c0_45, %c1_46] : memref<3x3xf32, #tpu.memory_space<smem>>
    %45 = vector.extract_strided_slice %43 {offsets = [0, 0, 0, 0], sizes = [1, 4, 8, 16], strides = [1, 1, 1, 1]} : vector<1x4x10x16xf32> to vector<1x4x8x16xf32>
    %46 = vector.broadcast %44 : f32 to vector<1x4x8x16xf32>
    %47 = arith.mulf %46, %45 : vector<1x4x8x16xf32>
    %48 = arith.addf %42, %47 : vector<1x4x8x16xf32>
    %c2_47 = arith.constant 2 : index
    %c1_48 = arith.constant 1 : index
    %49 = memref.load %arg2[%c2_47, %c1_48] : memref<3x3xf32, #tpu.memory_space<smem>>
    %50 = vector.extract_strided_slice %43 {offsets = [0, 0, 2, 0], sizes = [1, 4, 8, 16], strides = [1, 1, 1, 1]} : vector<1x4x10x16xf32> to vector<1x4x8x16xf32>
    %51 = vector.broadcast %49 : f32 to vector<1x4x8x16xf32>
    %52 = arith.mulf %51, %50 : vector<1x4x8x16xf32>
    %53 = arith.addf %48, %52 : vector<1x4x8x16xf32>
    %c0_49 = arith.constant 0 : index
    %c0_50 = arith.constant 0 : index
    %c0_51 = arith.constant 0 : index
    %c2_52 = arith.constant 2 : index
    %54 = vector.load %arg8[%c0_49, %c0_50, %c0_51, %c2_52] : memref<1x4x10x18xf32, #tpu.memory_space<vmem>>, vector<1x4x10x16xf32>
    %c0_53 = arith.constant 0 : index
    %c2_54 = arith.constant 2 : index
    %55 = memref.load %arg2[%c0_53, %c2_54] : memref<3x3xf32, #tpu.memory_space<smem>>
    %56 = vector.extract_strided_slice %54 {offsets = [0, 0, 0, 0], sizes = [1, 4, 8, 16], strides = [1, 1, 1, 1]} : vector<1x4x10x16xf32> to vector<1x4x8x16xf32>
    %57 = vector.broadcast %55 : f32 to vector<1x4x8x16xf32>
    %58 = arith.mulf %57, %56 : vector<1x4x8x16xf32>
    %59 = arith.addf %53, %58 : vector<1x4x8x16xf32>
    %c1_55 = arith.constant 1 : index
    %c2_56 = arith.constant 2 : index
    %60 = memref.load %arg2[%c1_55, %c2_56] : memref<3x3xf32, #tpu.memory_space<smem>>
    %61 = vector.extract_strided_slice %54 {offsets = [0, 0, 1, 0], sizes = [1, 4, 8, 16], strides = [1, 1, 1, 1]} : vector<1x4x10x16xf32> to vector<1x4x8x16xf32>
    %62 = vector.broadcast %60 : f32 to vector<1x4x8x16xf32>
    %63 = arith.mulf %62, %61 : vector<1x4x8x16xf32>
    %64 = arith.addf %59, %63 : vector<1x4x8x16xf32>
    %c2_57 = arith.constant 2 : index
    %c2_58 = arith.constant 2 : index
    %65 = memref.load %arg2[%c2_57, %c2_58] : memref<3x3xf32, #tpu.memory_space<smem>>
    %66 = vector.extract_strided_slice %54 {offsets = [0, 0, 2, 0], sizes = [1, 4, 8, 16], strides = [1, 1, 1, 1]} : vector<1x4x10x16xf32> to vector<1x4x8x16xf32>
    %67 = vector.broadcast %65 : f32 to vector<1x4x8x16xf32>
    %68 = arith.mulf %67, %66 : vector<1x4x8x16xf32>
    %69 = arith.addf %64, %68 : vector<1x4x8x16xf32>
    %70 = vector.broadcast %23 : vector<1x1x8x16xf32> to vector<1x4x8x16xf32>
    %71 = arith.addf %69, %70 : vector<1x4x8x16xf32>
    %cst_59 = arith.constant 0.000000e+00 : f32
    %72 = vector.broadcast %cst_59 : f32 to vector<1x4x8x16xf32>
    %73 = arith.maximumf %71, %72 : vector<1x4x8x16xf32>
    %c0_60 = arith.constant 0 : index
    %c0_61 = arith.constant 0 : index
    %c0_62 = arith.constant 0 : index
    %c0_63 = arith.constant 0 : index
    %74 = vector.load %arg7[%c0_60, %c0_61, %c0_62, %c0_63] : memref<1x4x8x16xf32, #tpu.memory_space<vmem>>, vector<1x4x8x16xf32>
    tpu.vector_store %arg7[%c0_60, %c0_61, %c0_62, %c0_63], %73 {strides = array<i32>} : memref<1x4x8x16xf32, #tpu.memory_space<vmem>>, vector<1x4x8x16xf32>,
    return
  }
  func.func @transform_0(%arg0: i32, %arg1: i32) -> (i32, i32) {
    %c0_i32 = arith.constant 0 : i32
    %c0_i32_0 = arith.constant 0 : i32
    %c0_i32_1 = arith.constant 0 : i32
    return %c0_i32, %c0_i32_0 : i32, i32
  }
  func.func @transform_1(%arg0: i32, %arg1: i32) -> (i32, i32) {
    %c0_i32 = arith.constant 0 : i32
    %c0_i32_0 = arith.constant 0 : i32
    %c0_i32_1 = arith.constant 0 : i32
    return %c0_i32, %c0_i32_0 : i32, i32
  }
  func.func @transform_2(%arg0: i32, %arg1: i32) -> (i32, i32, i32, i32) {
    %c0_i32 = arith.constant 0 : i32
    %c0_i32_0 = arith.constant 0 : i32
    %c0_i32_1 = arith.constant 0 : i32
    return %arg0, %c0_i32, %arg1, %c0_i32_0 : i32, i32, i32, i32
  }
  func.func @transform_3(%arg0: i32, %arg1: i32) -> (i32, i32, i32, i32) {
    %c1_i32 = arith.constant 1 : i32
    %0 = arith.muli %arg1, %c1_i32 : i32
    %c1_i32_0 = arith.constant 1 : i32
    %1 = arith.subi %0, %c1_i32_0 : i32
    %c0_i32 = arith.constant 0 : i32
    %2 = arith.maxsi %1, %c0_i32 : i32
    %c0_i32_1 = arith.constant 0 : i32
    %c0_i32_2 = arith.constant 0 : i32
    %c0_i32_3 = arith.constant 0 : i32
    return %arg0, %c0_i32_1, %2, %c0_i32_2 : i32, i32, i32, i32
  }
  func.func @transform_4(%arg0: i32, %arg1: i32) -> (i32, i32, i32, i32) {
    %c1_i32 = arith.constant 1 : i32
    %0 = arith.addi %arg1, %c1_i32 : i32
    %c1_i32_0 = arith.constant 1 : i32
    %1 = arith.muli %0, %c1_i32_0 : i32
    %c1_i32_1 = arith.constant 1 : i32
    %2 = arith.minsi %1, %c1_i32_1 : i32
    %c0_i32 = arith.constant 0 : i32
    %c0_i32_2 = arith.constant 0 : i32
    %c0_i32_3 = arith.constant 0 : i32
    return %arg0, %c0_i32, %2, %c0_i32_2 : i32, i32, i32, i32
  }
  func.func @transform_5(%arg0: i32, %arg1: i32) -> (i32, i32, i32, i32) {
    %c0_i32 = arith.constant 0 : i32
    %c0_i32_0 = arith.constant 0 : i32
    %c0_i32_1 = arith.constant 0 : i32
    return %arg0, %c0_i32, %arg1, %c0_i32_0 : i32, i32, i32, i32
  }
}

</mosaic_0001>

<bundles_post_ra>
// kernel: tpu_custom_call.1
= control target key start
LH: loop header
LB: loop body
LE: loop exit
PB: predicated region body
PF: predicated region fallthrough
CT: control target
= control target key end

     0   :  { %s2074_s0 = inlined_call_operand.hbm [shape: f32[3,3], index: 0, kind: input, shape index: {}]   ;;  %s2075_s1 = inlined_call_operand.<no memory space> [shape: f32[1,1], index: 1, kind: input, shape index: {}]   ;;  %s2076_s2 = inlined_call_operand.hbm [shape: f32[2,4,16,16], index: 2, kind: input, shape index: {}]   ;;  %s2077_s3 = inlined_call_operand.hbm [shape: f32[2,4,16,16], index: 3, kind: input, shape index: {}]   ;;  %s2078_s4 = inlined_call_operand.hbm [shape: f32[2,4,16,16], index: 4, kind: input, shape index: {}]   ;;  %s2079_s5 = inlined_call_operand.hbm [shape: f32[2,4,16,16], index: 5, kind: output, shape index: {}]  }
   0x1   :  { %2102 = sst [smem:[#allocation31_spill]] %s2074_s0 }
   0x2   :  { %2103 = sst [smem:[#allocation32_spill]] %s2076_s2 }
   0x3   :  { %2104 = sst [smem:[#allocation33_spill]] %s2077_s3 }
   0x4   :  { %2105 = sst [smem:[#allocation34_spill]] %s2078_s4 }
   0x5   :  { %2106 = sst [smem:[#allocation35_spill]] %s2079_s5 }
   0x6   :  { %10 = sst [smem:[#allocation3]] %s2075_s1 }
   0x7   :  { %11 = vsyncpa [#allocation7], 0 }
   0x8   :  { %12 = vsyncpa [#allocation5], 0 }
   0x9   :  { %14 = vsyncpa [#allocation5 + $0x1], 0 }
   0xa   :  { %15 = vsyncpa [#allocation10], 0 }
   0xb   :  { %17 = vsyncpa [#allocation10 + $0x1], 0 }
   0xc   :  { %18 = vsyncpa [#allocation6], 0 }
   0xd   :  { %20 = vsyncpa [#allocation6 + $0x1], 0  ;;  %s1483_s20 = smov 0   ;;  %s1485_s21 = smov 0  }
   0xe   :  { %s1487_s22 = smov 0   ;;  %s1489_s23 = smov 0  }
   0xf   :  { %s1491_s24 = smov 0   ;;  %s1493_s25 = smov 0  }
  0x10   :  { %s1495_s1 = smov 0   ;;  %s1497_s26 = smov 0  }
  0x11   :  { %s1499_s27 = smov 0   ;;  %s1501_s28 = smov 0  }
  0x12   :  { %s1503_s29 = smov 0   ;;  %s1505_s30 = smov 0  }
  0x13   :  { %s1507_s6 = smov 0   ;;  %s1509_s7 = smov 0  }
  0x14 LB: > { %2107 = sst [smem:[#allocation18_spill]] %s1405_s25  ;;  %s35_s8 = sadd.s32 1, %s1429_s30  ;;  %s1437_s7 = sphi %s1509_s7, %s26_s7   ;;  %s1433_s6 = sphi %s1507_s6, %s2165_s6   ;;  %s1429_s30 = sphi %s1505_s30, %s2154_s30   ;;  %s1425_s29 = sphi %s1503_s29, %s2164_s29   ;;  %s1421_s28 = sphi %s1501_s28, %s2163_s28   ;;  %s1417_s27 = sphi %s1499_s27, %s2152_s27   ;;  %s1413_s26 = sphi %s1497_s26, %s2162_s26   ;;  %s1409_s1 = sphi %s1495_s1, %s2161_s1   ;;  %s1405_s25 = sphi %s1493_s25, %s2150_s25   ;;  %s1401_s24 = sphi %s1491_s24, %s2160_s24   ;;  %s1397_s23 = sphi %s1489_s23, %s2159_s23   ;;  %s1393_s22 = sphi %s1487_s22, %s2158_s22   ;;  %s1389_s21 = sphi %s1485_s21, %s2157_s21   ;;  %s1385_s20 = sphi %s1483_s20, %s2156_s20  }
  0x15   : > { %2108 = sst [smem:[#allocation19_spill]] %s1409_s1  ;;  %s38_s9 = sadd.s32 1, %s1433_s6 }
  0x16   : > { %2109 = sst [smem:[#allocation20_spill]] %s1417_s27  ;;  %p36_p0 = scmp.ge.s32.totalorder %s35_s8, 2 }
  0x17   : > { %2110 = sst [smem:[#allocation21_spill]] %s1421_s28  ;;  %p97_p1 = scmp.eq.s32.totalorder %s1437_s7, 0 }
  0x18   : > { %2111 = sst [smem:[#allocation22_spill]] %s1425_s29  ;;  %s123_s10 = sadd.s32 1, %s1405_s25 }
  0x19   : > { %2112 = sst [smem:[#allocation23_spill]] %s1429_s30  ;;  %s2167_s8 = smov (%p36_p0, %s35_s8), 0 }
  0x1a   : > { %2113 = sst [smem:[#allocation24_spill]] %s2167_s8  ;;  %s2169_s9 = smov (!%p36_p0, %s38_s9), %s1433_s6 }
  0x1b   : > { %s85_s11 = ssub.s32 %s1429_s30, %s2167_s8  ;;  %p40_p2 = scmp.ge.s32.totalorder %s2169_s9, 2 }
  0x1c   : > { %p130_p3 = scmp.ne.s32.totalorder %s1405_s25, %s1401_s24  ;;  %p2085_p6 = scmp.lt.s32.totalorder %s1437_s7, 4 }
  0x1d   : > { %s2171_s9 = smov (%p40_p2, %s2169_s9), 0  ;;  %s258_s16 = sand.u32 1, %s1437_s7  }
  0x1e   : > { %2114 = sst [smem:[#allocation25_spill]] %s2171_s9  ;;  %s1568_s12 = ssub.s32 %s1433_s6, %s2171_s9 }
  0x1f   : > { %s1571_s13 = sor.u32 %s85_s11, %s1568_s12  ;;  %p1575_p4 = por %p130_p3, %p97_p1 }
  0x20   : > { %p87_p5 = scmp.eq.s32.totalorder %s1571_s13, 0  ;;  %p2084_p7 = scmp.eq.s32.totalorder %s1568_s12, 0 }
  0x21   : > { %s260_s17 = sand.u32 1, %s1405_s25   ;;  %s2086_s11 = sshll.u32 %s1433_s6, 6 }
  0x22   : > { %s1588_s18 = scalar_select %p2084_p7, %s1405_s25, %s123_s10  }
  0x23   : > { %s987_s19 = sshll.u32 %s260_s17, 5  ;;  %s2117_s3 = sld [smem:[#allocation33_spill]] }
  0x24   : > { %2116 = sst [smem:[#allocation26_spill]] %s1588_s18  ;;  %s262_s29 = scalar_lea.vmem [#allocation9], %s987_s19 }
  0x25   : > { %s274_s28 = sshll.u32 %s262_s29, 4  ;;  %p1600_p8 = pnand %p2085_p6, %p1575_p4  ;;  %s275_s28 = int_to_ptr.vmem [resolvable:$true] %s274_s28 }
  0x26   : > { %s1604_s10 = scalar_lea.sflag [#allocation10], %s258_s16 }
  0x27   : > { %p1174_p10 = pneg %p1600_p8 }
  0x29   : > { %s271_s5 = scalar_lea.hbm %s2117_s3, %s2086_s11  ;;  %s1177_s8 = scalar_lea.hbm %s2117_s3, 128 }
  0x2a   : > { %s272_s4 = sshll.u32 %s271_s5, 4  ;;  %s273_s4 = int_to_ptr.hbm [resolvable:$true] %s272_s4 }
  0x2b   : > { %s1170_s17 = sshra.s32 %s273_s4, 4  ;;  %s1171_s17 = int_to_ptr.hbm [resolvable:$true] %s1170_s17 }
  0x2c   : > { %s1172_s18 = scalar_lea.hbm %s1171_s17, 32  ;;  %p1178_p13 = scmp.lt.s32.totalorder %s1171_s17, %s2117_s3 }
  0x2d   : > { %p1173_p9 = scmp.ne.s32.totalorder %s1171_s17, %s1172_s18  ;;  %p1179_p0 = scmp.lt.s32.totalorder %s1177_s8, %s1172_s18 }
  0x2f   : > { %p1175_p11 = pnand %p1174_p10, %p1173_p9  ;;  %p1180_p2 = por %p1179_p0, %p1178_p13 }
  0x31   : > { %p1176_p12 = pneg %p1175_p11 }
  0x33   : > { %p1181_p3 = pnand %p1180_p2, %p1176_p12 }
  0x35   : > { %1184 = shalt.err (!%p1181_p3)
}
  0x36   : > { %s2087_s16 = smov 256   ;;  %s2089_s19 = smov 128  }
  0x37   : > { %s2091_s5 = smov 8   ;;  %s1621_s18 = sadd.s32 4294967295, %s1437_s7  }
  0x38   : > { %1035 = dma.hbm_to_vmem [thread:$0]  (!%p1600_p8), %s273_s4, 512, %s275_s28, %s1604_s10, %s2087_s16, %s2089_s19, %s2091_s5  }
  0x39   : > { %s978_s17 = sadd.s32 4294967294, %s1437_s7   ;;  %p102_p4 = scmp.ne.s32.totalorder %s1413_s26, %s1409_s1 }
  0x3a   : > { %p103_p9 = scmp.eq.s32.totalorder %s1621_s18, 0  ;;  %p136_p10 = scmp.ne.s32.totalorder %s1401_s24, %s1397_s23 }
  0x3b   : > { %p170_p11 = scmp.ne.s32.totalorder %s1389_s21, %s1385_s20  ;;  %p202_p2 = scmp.eq.s32.totalorder %s978_s17, 3 }
  0x3c   : > { %p1634_p8 = por %p103_p9, %p102_p4  ;;  %p1640_p13 = por %p136_p10, %p103_p9 }
  0x3d   : > { %p1646_p0 = por %p170_p11, %p103_p9  ;;  %p981_p3 = scmp.ge.s32.totalorder %s1437_s7, 1 }
  0x3e   : > { %p209_p7 = scmp.lt.s32.totalorder %s1437_s7, 5  ;;  %p1652_p6 = por %p202_p2, %p102_p4 }
  0x3f   : > { %s2121_s23 = scalar_select %p1646_p0, 1, 0 }
  0x40   : > { %s2123_s20 = scalar_select %p1652_p6, 1, 0 }
  0x41   : > { %2122 = sst [smem:[#allocation27_spill]] %s2121_s23  ;;  %p1656_p12 = pnand %p981_p3, %p209_p7 }
  0x42   : > { %2124 = sst [smem:[#allocation28_spill]] %s2123_s20  ;;  %s2127_s14 = sshll.u32 %s1433_s6, 3 }
  0x43   : > { %s2126_s0 = sld [smem:[#allocation31_spill]]  ;;  %p1025_p10 = pneg %p1656_p12 }
  0x44   : > { %s243_s17 = sadd.s32 %s1429_s30, %s2127_s14  ;;  %s89_s11 = sadd.s32 1, %s1417_s27 }
  0x45   : > { %p1026_p11 = pnand %p1025_p10, %p103_p9  ;;  %p96_p7 = scmp.ne.s32.totalorder %s1417_s27, %s1413_s26 }
  0x46   : > { %s1674_s16 = scalar_select %p87_p5, %s1417_s27, %s89_s11  }
  0x47   : > { %s1442_s19 = smov [#allocation4]   ;;  %p98_p4 = por %p97_p1, %p96_p7 }
  0x48   : > { %2128 = sst [smem:[#allocation29_spill]] %s1674_s16  ;;  %p2129_p2 = scmp.eq.s32.totalorder %s1621_s18, 3 }
  0x49   : > { %s221_s9 = sshll.u32 %s2126_s0, 4  ;;  %s235_s8 = sand.u32 1, %s1417_s27   ;;  %s222_s9 = int_to_ptr.hbm [resolvable:$true] %s221_s9 }
  0x4a   : > { %1028 = dma.hbm_to_smem (!%p1026_p11), %s222_s9, 64, %s1442_s19, [#allocation7]  }
  0x4b   : > { %p1682_p3 = por %p2129_p2, %p96_p7  ;;  %s986_s13 = sshll.u32 %s243_s17, 3 }
  0x4c   : > { %s984_s11 = sshll.u32 %s235_s8, 5  ;;  %s2132_s2 = sld [smem:[#allocation32_spill]] }
  0x4d   : > { %s2130_s29 = scalar_select %p1682_p3, 1, 0 }
  0x4e   : > { %s239_s9 = scalar_lea.vmem [#allocation8], %s984_s11  ;;  %p2133_p5 = scmp.lt.s32.totalorder %s1437_s7, 4 }
  0x4f   : > { %2131 = sst [smem:[#allocation30_spill]] %s2130_s29  ;;  %s248_s3 = sshll.u32 %s239_s9, 4  ;;  %s249_s3 = int_to_ptr.vmem [resolvable:$true] %s248_s3 }
  0x50   : > { %p1030_p10 = pnand %p2133_p5, %p98_p4  ;;  %s236_s30 = scalar_lea.sflag [#allocation5], %s235_s8 }
  0x51   : > { %s2134_s16 = smov 8   ;;  %s2135_s27 = smov 128  }
  0x52   : > { %s245_s0 = scalar_lea.hbm %s2132_s2, %s986_s13  ;;  %s2136_s17 = smov 256  }
  0x53   : > { %s246_s19 = sshll.u32 %s245_s0, 4  ;;  %s157_s25 = sadd.s32 1, %s1393_s22  ;;  %s247_s19 = int_to_ptr.hbm [resolvable:$true] %s246_s19 }
  0x54   : > { %1032 = dma.hbm_to_vmem [thread:$0]  (!%p1030_p10), %s247_s19, 512, %s249_s3, %s236_s30, %s2136_s17, %s2135_s27, %s2134_s16  }
  0x55   : > { %p164_p11 = scmp.ne.s32.totalorder %s1393_s22, %s1389_s21  ;;  %s286_s5 = sand.u32 1, %s1393_s22  }
  0x56   : > { %s991_s0 = sshll.u32 %s286_s5, 5  ;;  %s2137_s13 = sshll.u32 %s1433_s6, 6 }
  0x57   : > { %p166_p7 = por %p164_p11, %p97_p1  ;;  %s1381_s11 = sadd.s32 8, %s2137_s13 }
  0x58   : > { %s2138_s2 = sld [smem:[#allocation34_spill]]  ;;  %s288_s1 = scalar_lea.vmem [#allocation11], %s991_s0 }
  0x59   : > { %s300_s29 = sshll.u32 %s288_s1, 4  ;;  %p2139_p4 = scmp.eq.s32.totalorder %s1568_s12, 0  ;;  %s301_s29 = int_to_ptr.vmem [resolvable:$true] %s300_s29 }
  0x5a   : > { %p2140_p2 = pmov %p2133_p5 }
  0x5b   : > { %s1709_s8 = scalar_select %p2139_p4, %s1393_s22, %s157_s25  }
  0x5c   : > { %p1036_p5 = pnand %p2140_p2, %p166_p7  ;;  %312 = sbr.rel (%p1656_p12) target bundleno = 421 (0x1a5), region = 40 }
  0x5e   : > { %s297_s20 = scalar_lea.hbm %s2138_s2, %s1381_s11 }
  0x5f   : > { %s298_s23 = sshll.u32 %s297_s20, 4  ;;  %s299_s23 = int_to_ptr.hbm [resolvable:$true] %s298_s23 }
  0x60   : > { %1038 = dma.hbm_to_vmem [thread:$0]  (!%p1036_p5), %s299_s23, 512, %s301_s29, %s1604_s10, %s2136_s17, %s2135_s27, %s2134_s16  }
  0x61   : > { %1360 = dma.done.wait (%p103_p9), [#allocation7], 64  }
  0x62   : > { %1362 = vsyncadd (%p103_p9), [#allocation7], 4294967232  ;;  %s1724_s2 = sand.u32 1, %s1413_s26  }
  0x63   : > { %s996_s3 = sshll.u32 %s1724_s2, 5  ;;  %s320_s25 = scalar_lea.sflag [#allocation5], %s1724_s2 }
  0x64   : > { %s323_s1 = scalar_lea.vmem [#allocation8], %s996_s3 }
  0x65   : > { %1364 = dma.done.wait (%p1634_p8), %s320_s25, 512  }
  0x66   : > { %1366 = vsyncadd (%p1634_p8), %s320_s25, 4294966784  ;;  %s329_s27 = sand.u32 1, %s1621_s18   ;;  %s331_s30 = sand.u32 1, %s1401_s24  }
  0x67   : > { %s997_s12 = sshll.u32 %s331_s30, 5  ;;  %s330_s10 = scalar_lea.sflag [#allocation10], %s329_s27 }
  0x68   : > { %s1736_s16 = scalar_lea.vmem [#allocation9], %s997_s12 }
  0x69   : > { %1368 = dma.done.wait (%p1640_p13), %s330_s10, 512  }
  0x6a   : > { %1370 = vsyncadd (%p1640_p13), %s330_s10, 4294966784  ;;  %s341_s20 = sand.u32 1, %s1389_s21  }
  0x6b   : > { %s998_s15 = sshll.u32 %s341_s20, 5 }
  0x6c   : > { %s1743_s4 = scalar_lea.vmem [#allocation11], %s998_s15 }
  0x6d   : > { %1372 = dma.done.wait (%p1646_p0), %s330_s10, 512  }
  0x6e   : > { %1374 = vsyncadd (%p1646_p0), %s330_s10, 4294966784 }
  0x6f   : > { %349 = sfence }
  0x70   : > { %v1749_v0 = vld [vmem:[%s323_s1 + $0x10] sm:$0xff]  ;;  %s2142_s18 = sld [smem:[#allocation21_spill]]  ;;  %vm498_vm0 = vcmask 130048   ;;  %v1751_v1 = vld [vmem:[%s323_s1] sm:$0xff]  ;;  %s1443_s28 = smov 1   ;;  %v1762_v4 = vld [vmem:[%s323_s1 + $0x18] sm:$0xff] }
  0x71   : > { %420 = vrot.lane.b32.xlu1 %v1749_v0, %s1443_s28  ;;  %v501_v2 = vsel %vm498_vm0, %v1749_v0, -inf  ;;  %416 = vrot.lane.b32.xlu0 %v1751_v1, %s1443_s28  ;;  %v499_v3 = vsel %vm498_vm0, %v1751_v1, -inf  ;;  %v502_v5 = vsel %vm498_vm0, %v1762_v4, -inf  ;;  %v1766_v6 = vld [vmem:[%s323_s1 + $0x8] sm:$0xff]  ;;  %v439_v10 = vld [vmem:[%s1736_s16 + $0x7] sm:$0x1] }
  0x72   : > { %v504_v7 = vmax.f32 %v501_v2, %v502_v5  ;;  %v500_v8 = vsel %vm498_vm0, %v1766_v6, -inf  ;;  %v442_v14 = vld [vmem:[%s1736_s16 + $0x1f] sm:$0x1]  ;;  %v441_v15 = vld [vmem:[%s1736_s16 + $0x17] sm:$0x1]  ;;  %vm392_vm1 = vcmask 7168  }
  0x73   : > { %v503_v9 = vmax.f32 %v499_v3, %v500_v8  ;;  %v440_v16 = vld [vmem:[%s1736_s16 + $0xf] sm:$0x1]  ;;  %v450_v21 = vld [vmem:[%s1743_s4 + $0x10] sm:$0x1]  ;;  %v449_v22 = vld [vmem:[%s1743_s4 + $0x8] sm:$0x1] }
  0x74   : > { %v448_v23 = vld [vmem:[%s1743_s4] sm:$0x1]  ;;  %v451_v27 = vld [vmem:[%s1743_s4 + $0x18] sm:$0x1]  ;;  %vm402_vm2 = vcmask 146568   ;;  %v1444_v29 = vmov 0.0  }
  0x75   : > { %v1771_v11 = vmax.f32 %v503_v9, %v504_v7  ;;  %393 = vst.msk [vmem:[#allocation2] sm:$0xff] %vm392_vm1, %v1444_v29  ;;  %vm394_vm3 = vcmask 1024   ;;  %vm404_vm4 = vcmask 140424   ;;  %vm473_vm5 = vcmask 131080   ;;  %s1000_s0 = sld [smem:[#allocation4 + $0x81]]  ;;  %s1445_s25 = smov 127  }
  0x76   : > { %p433_p1 = scmp.gt.s32.totalorder %s2142_s18, 0  ;;  %p436_p9 = scmp.lt.s32.totalorder %s2142_s18, 1  ;;  %403 = vst.msk [vmem:[#allocation2] sm:$0xff] %vm402_vm2, %v1444_v29  ;;  %vm428_vm6 = vcmask 138248   ;;  %vm590_vm7 = vcmask 1045504   ;;  %vm551_vm8 = vcmask 1046528  }
  0x77   : > { %396 = vst.msk [vmem:[#allocation2 + $0x10] sm:$0xff] %vm392_vm1, %v1444_v29  ;;  %s1003_s13 = sld [smem:[#allocation4 + $0x1]]  ;;  %s1446_s12 = smov 126  }
  0x78   : > { %s434_s29 = scalar_select %p433_p1, 1, 0  ;;  %398 = vst.msk [vmem:[#allocation2 + $0x20] sm:$0xff] %vm392_vm1, %v1444_v29 }
  0x79   : > { %422 = vrot.lane.b32.xlu1 %v1762_v4, %s1443_s28  ;;  %418 = vrot.lane.b32.xlu0 %v1766_v6, %s1443_s28  ;;  %s437_s17 = scalar_select %p436_p9, 1, 0  ;;  %400 = vst.msk [vmem:[#allocation2 + $0x30] sm:$0xff] %vm392_vm1, %v1444_v29 }
  0x7a   : > { %s435_s19 = scvt.s32.f32 %s434_s29  ;;  %406 = vst.msk [vmem:[#allocation2 + $0x10] sm:$0xff] %vm402_vm2, %v1444_v29  ;;  %s523_s11 = sld [smem:[#allocation4]] }
  0x7b   : > { %s438_s5 = scvt.s32.f32 %s437_s17  ;;  %408 = vst.msk [vmem:[#allocation2 + $0x20] sm:$0xff] %vm402_vm2, %v1444_v29  ;;  %s1001_s14 = sld [smem:[#allocation4 + $0x80]]  ;;  %v1798_v38 = vstv %s1000_s0 }
  0x7c   : > { %v443_v12 = vstv %s435_s19  ;;  %410 = vst.msk [vmem:[#allocation2 + $0x30] sm:$0xff] %vm402_vm2, %v1444_v29  ;;  %s1002_s9 = sld [smem:[#allocation4 + $0x100]]  ;;  %v511_v44 = vmul.f32 %v1798_v38, %v1751_v1  ;;  %v512_v61 = vmul.f32 %v1798_v38, %v1766_v6  ;;  %s381_s15 = scalar_lea.vmem [#allocation12], %s996_s3 }
  0x7d   : > { %v444_v13 = vmul.f32 %v443_v12, %v439_v10  ;;  %v447_v17 = vmul.f32 %v443_v12, %v442_v14  ;;  %v446_v18 = vmul.f32 %v443_v12, %v441_v15  ;;  %v445_v19 = vmul.f32 %v443_v12, %v440_v16  ;;  %395 = vst.msk [vmem:[#allocation2 + $0x8] sm:$0x3] %vm394_vm3, %v1444_v29  ;;  %s1004_s1 = sld [smem:[#allocation4 + $0x101]]  ;;  %s827_s3 = sshll.u32 %s381_s15, 4  ;;  %s828_s3 = int_to_ptr.vmem [resolvable:$true] %s827_s3 }
  0x7e   : > { %v452_v20 = vstv %s438_s5  ;;  %405 = vst.msk [vmem:[#allocation2 + $0x8] sm:$0x3] %vm404_vm4, %v1444_v29  ;;  %v612_v37 = vstv %s1003_s13  ;;  %s1825_s27 = sld [smem:[#allocation4 + $0x2]]  ;;  %v513_v16 = vmul.f32 %v1798_v38, %v1749_v0  ;;  %s814_s13 = scalar_lea.sflag [#allocation6], %s1724_s2 }
  0x7f   : > { %461 = vrot.lane.b32.xlu2 %v444_v13, %s1443_s28  ;;  %v455_v24 = vmul.f32 %v452_v20, %v450_v21  ;;  %v454_v25 = vmul.f32 %v452_v20, %v449_v22  ;;  %v453_v26 = vmul.f32 %v452_v20, %v448_v23  ;;  %v456_v28 = vmul.f32 %v452_v20, %v451_v27  ;;  %s1006_s30 = sld [smem:[#allocation4 + $0x82]] }
  0x80   : > { %397 = vst.msk [vmem:[#allocation2 + $0x18] sm:$0x3] %vm394_vm3, %v1444_v29  ;;  %v1804_v41 = vstv %s523_s11  ;;  %s1007_s10 = sld [smem:[#allocation4 + $0x102]] }
  0x81   : > { %467 = vrot.lane.b32.xlu1 %v447_v17, %s1443_s28  ;;  %465 = vrot.lane.b32.xlu0 %v446_v18, %s1443_s28  ;;  %399 = vst.msk [vmem:[#allocation2 + $0x28] sm:$0x3] %vm394_vm3, %v1444_v29  ;;  %v1806_v42 = vstv %s1001_s14  ;;  %s506_s16 = sld [smem:[#allocation3]] }
  0x82   : > { %401 = vst.msk [vmem:[#allocation2 + $0x38] sm:$0x3] %vm394_vm3, %v1444_v29  ;;  %v1814_v46 = vstv %s1002_s9  ;;  %s2143_s23 = sld [smem:[#allocation22_spill]] }
  0x83   : > { %409 = vst.msk [vmem:[#allocation2 + $0x28] sm:$0x3] %vm404_vm4, %v1444_v29  ;;  %v1837_v62 = vstv %s1004_s1  ;;  %s2144_s17 = sld [smem:[#allocation35_spill]] }
  0x84   : > { %407 = vst.msk [vmem:[#allocation2 + $0x18] sm:$0x3] %vm404_vm4, %v1444_v29  ;;  %v1858_v15 = vstv %s1825_s27 }
  0x85   : > { %411 = vst.msk [vmem:[#allocation2 + $0x38] sm:$0x3] %vm404_vm4, %v1444_v29  ;;  %v1877_v23 = vstv %s1006_s30 }
  0x87   : > { %463 = vrot.lane.b32.xlu2 %v445_v19, %s1443_s28 }
  0x88   : > { %s1009_s20 = sshll.u32 %s2143_s23, 3 }
  0x89   : > { %486 = vrot.lane.b32.xlu1 %v455_v24, %s1443_s28  ;;  %484 = vrot.lane.b32.xlu0 %v454_v25, %s1443_s28  ;;  %v514_v25 = vmul.f32 %v1798_v38, %v1762_v4  ;;  %s824_s4 = sadd.s32 %s2142_s18, %s1009_s20  ;;  %s1295_s1 = scalar_lea.hbm %s2144_s17, 128 }
  0x8f   : > { %482 = vrot.lane.b32.xlu2 %v453_v26, %s1443_s28 }
  0x97   : > { %488 = vrot.lane.b32.xlu2 %v456_v28, %s1443_s28  ;;  %s1010_s28 = sshll.u32 %s824_s4, 3 }
  0x98   : > { %s826_s5 = scalar_lea.hbm %s2144_s17, %s1010_s28 }
  0x99   : > { %s829_s18 = sshll.u32 %s826_s5, 4  ;;  %s830_s18 = int_to_ptr.hbm [resolvable:$true] %s829_s18 }
  0x9a   : > { %s1289_s11 = sshra.s32 %s830_s18, 4  ;;  %s1290_s11 = int_to_ptr.hbm [resolvable:$true] %s1289_s11 }
  0x9b   : > { %s1291_s14 = scalar_lea.hbm %s1290_s11, 32  ;;  %p1296_p0 = scmp.lt.s32.totalorder %s1290_s11, %s2144_s17 }
  0x9c   : > { %p1292_p12 = scmp.ne.s32.totalorder %s1290_s11, %s1291_s14  ;;  %p1297_p10 = scmp.lt.s32.totalorder %s1295_s1, %s1291_s14 }
  0x9e   : > { %p1293_p8 = pnand %p1292_p12, %p1682_p3  ;;  %p1298_p11 = por %p1297_p10, %p1296_p0 }
  0xa0   : > { %p1294_p13 = pneg %p1293_p8 }
  0xa2   : > { %p1299_p7 = pnand %p1298_p11, %p1294_p13 }
  0xd9   : > { %v462_v30 = vpop.permute.xlu2 %461 }
  0xda   : > { %474 = vst.msk [vmem:[#allocation2] sm:$0x1] %vm473_vm5, %v462_v30 }
  0xe1   : > { %v464_v31 = vpop.permute.xlu2 %463 }
  0xe2   : > { %475 = vst.msk [vmem:[#allocation2 + $0x10] sm:$0x1] %vm473_vm5, %v464_v31 }
  0xe3   : > { %v421_v32 = vpop.permute.xlu1 %420  ;;  %v417_v33 = vpop.permute.xlu0 %416 }
  0xe4   : > { %431 = vst.msk [vmem:[#allocation2 + $0x21] sm:$0xff] %vm428_vm6, %v421_v32 }
  0xe5   : > { %429 = vst.msk [vmem:[#allocation2 + $0x1] sm:$0xff] %vm428_vm6, %v417_v33 }
  0xe9   : > { %v483_v34 = vpop.permute.xlu2 %482 }
  0xea   : > { %494 = vst.msk [vmem:[#allocation2 + $0x9] sm:$0x1] %vm473_vm5, %v483_v34 }
  0xeb   : > { %v423_v35 = vpop.permute.xlu1 %422  ;;  %v419_v36 = vpop.permute.xlu0 %418 }
  0xec   : > { %432 = vst.msk [vmem:[#allocation2 + $0x31] sm:$0xff] %vm428_vm6, %v423_v35  ;;  %v1802_v40 = vld [vmem:[#allocation2] sm:$0xff] }
  0xed   : > { %430 = vst.msk [vmem:[#allocation2 + $0x11] sm:$0xff] %vm428_vm6, %v419_v36  ;;  %v613_v43 = vmul.f32 %v612_v37, %v1802_v40  ;;  %v525_v47 = vmul.f32 %v1804_v41, %v1802_v40  ;;  %v535_v48 = vmul.f32 %v1806_v42, %v1802_v40  ;;  %v574_v50 = vmul.f32 %v1814_v46, %v1802_v40 }
  0xee   : > { %v639_v6 = vmul.f32 %v1837_v62, %v1802_v40  ;;  %v685_v26 = vmul.f32 %v1858_v15, %v1802_v40  ;;  %v1892_v31 = vmul.f32 %v1877_v23, %v1802_v40 }
  0xef   : > { %621 = vrot.lane.b32.xlu0 %v613_v43, %s1445_s25  ;;  %v529_v54 = vadd.f32 %v525_v47, %v511_v44  ;;  %v552_v55 = vrot.slane %v535_v48, 1  ;;  %v591_v57 = vrot.slane %v574_v50, 2 }
  0xf0   : > { %v655_v20 = vrot.slane %v639_v6, 2 }
  0xf1   : > { %v489_v39 = vpop.permute.xlu2 %488  ;;  %v1812_v45 = vld [vmem:[#allocation2 + $0x8] sm:$0x3] }
  0xf2   : > { %497 = vst.msk [vmem:[#allocation2 + $0x39] sm:$0x1] %vm473_vm5, %v489_v39  ;;  %v536_v49 = vmul.f32 %v1806_v42, %v1812_v45  ;;  %v575_v53 = vmul.f32 %v1814_v46, %v1812_v45  ;;  %v640_v9 = vmul.f32 %v1837_v62, %v1812_v45  ;;  %v1896_v4 = vmul.f32 %v1877_v23, %v1812_v45 }
  0xf3   : > { %v468_v51 = vpop.permute.xlu1 %467  ;;  %v466_v52 = vpop.permute.xlu0 %465 }
  0xf4   : > { %477 = vst.msk [vmem:[#allocation2 + $0x30] sm:$0x1] %vm473_vm5, %v468_v51  ;;  %v553_v56 = vrot.slane %v536_v49, 1  ;;  %v1831_v58 = vld [vmem:[#allocation2 + $0x10] sm:$0xff]  ;;  %v592_v59 = vrot.slane %v575_v53, 2  ;;  %v656_v21 = vrot.slane %v640_v9, 2 }
  0xf5   : > { %476 = vst.msk [vmem:[#allocation2 + $0x20] sm:$0x1] %vm473_vm5, %v466_v52  ;;  %v614_v60 = vmul.f32 %v612_v37, %v1831_v58  ;;  %v526_v3 = vmul.f32 %v1804_v41, %v1831_v58  ;;  %v686_v28 = vmul.f32 %v1858_v15, %v1831_v58  ;;  %v537_v47 = vmul.f32 %v1806_v42, %v1831_v58 }
  0xf6   : > { %v554_v63 = vsel %vm551_vm8, %v552_v55, %v553_v56  ;;  %v593_v1 = vsel %vm590_vm7, %v591_v57, %v592_v59  ;;  %v657_v29 = vsel %vm590_vm7, %v655_v20, %v656_v21  ;;  %v576_v56 = vmul.f32 %v1814_v46, %v1831_v58 }
  0xf7   : > { %623 = vrot.lane.b32.xlu1 %v614_v60, %s1445_s25  ;;  %v568_v2 = vadd.f32 %v554_v63, %v529_v54  ;;  %v1851_v12 = vadd.f32 %v526_v3, %v512_v61 }
  0xf9   : > { %v1849_v10 = vadd.f32 %v593_v1, %v568_v2  ;;  %v1866_v19 = vld [vmem:[#allocation2 + $0x38] sm:$0x3] }
  0xfa   : > { %v1875_v0 = vmul.f32 %v1837_v62, %v1866_v19  ;;  %v542_v39 = vmul.f32 %v1806_v42, %v1866_v19  ;;  %v581_v53 = vmul.f32 %v1814_v46, %v1866_v19 }
  0xfb   : > { %v487_v5 = vpop.permute.xlu1 %486  ;;  %v485_v7 = vpop.permute.xlu0 %484  ;;  %v1843_v8 = vld [vmem:[#allocation2 + $0x30] sm:$0xff] }
  0xfc   : > { %496 = vst.msk [vmem:[#allocation2 + $0x29] sm:$0x1] %vm473_vm5, %v487_v5  ;;  %v616_v13 = vmul.f32 %v612_v37, %v1843_v8  ;;  %v1855_v14 = vld [vmem:[#allocation2 + $0x20] sm:$0xff]  ;;  %v645_v32 = vmul.f32 %v1837_v62, %v1843_v8  ;;  %v665_v33 = vrot.slane %v1875_v0, 2  ;;  %v528_v48 = vmul.f32 %v1804_v41, %v1843_v8 }
  0xfd   : > { %495 = vst.msk [vmem:[#allocation2 + $0x19] sm:$0x1] %vm473_vm5, %v485_v7  ;;  %v687_v17 = vmul.f32 %v1858_v15, %v1855_v14  ;;  %v615_v18 = vmul.f32 %v612_v37, %v1855_v14  ;;  %v527_v22 = vmul.f32 %v1804_v41, %v1855_v14  ;;  %v539_v27 = vmul.f32 %v1806_v42, %v1855_v14 }
  0xfe   : > { %627 = vrot.lane.b32.xlu0 %v616_v13, %s1445_s25  ;;  %v578_v35 = vmul.f32 %v1814_v46, %v1855_v14  ;;  %v643_v36 = vmul.f32 %v1837_v62, %v1855_v14  ;;  %v541_v51 = vmul.f32 %v1806_v42, %v1843_v8  ;;  %v580_v52 = vmul.f32 %v1814_v46, %v1843_v8 }
  0xff   : > { %625 = vrot.lane.b32.xlu2 %v615_v18, %s1445_s25  ;;  %697 = vrot.lane.b32.xlu1 %v687_v17, %s1446_s12  ;;  %v531_v24 = vadd.f32 %v527_v22, %v513_v16  ;;  %v558_v44 = vrot.slane %v539_v27, 1  ;;  %v664_v54 = vrot.slane %v645_v32, 2  ;;  %v562_v61 = vrot.slane %v542_v39, 1 }
 0x100   : > { %v597_v41 = vrot.slane %v578_v35, 2  ;;  %v661_v57 = vrot.slane %v643_v36, 2  ;;  %v532_v3 = vadd.f32 %v528_v48, %v514_v25  ;;  %v561_v7 = vrot.slane %v541_v51, 1 }
 0x101   : > { %v600_v6 = vrot.slane %v580_v52, 2  ;;  %v601_v9 = vrot.slane %v581_v53, 2  ;;  %v555_v13 = vrot.slane %v537_v47, 1  ;;  %v594_v17 = vrot.slane %v576_v56, 2 }
 0x102   : > { %v688_v21 = vmul.f32 %v1858_v15, %v1843_v8  ;;  %v727_v32 = vrot.slane %v1892_v31, 1  ;;  %v756_v39 = vstv %s1007_s10  ;;  %v718_v47 = vmul.f32 %v1877_v23, %v1866_v19 }
 0x103   : > { %v1888_v30 = vld [vmem:[#allocation2 + $0x28] sm:$0x3]  ;;  %v757_v48 = vmul.f32 %v756_v39, %v1802_v40  ;;  %v715_v51 = vmul.f32 %v1877_v23, %v1855_v14 }
 0x104   : > { %v540_v34 = vmul.f32 %v1806_v42, %v1888_v30  ;;  %v644_v37 = vmul.f32 %v1837_v62, %v1888_v30  ;;  %v579_v38 = vmul.f32 %v1814_v46, %v1888_v30  ;;  %v1919_v49 = vld [vmem:[#allocation2 + $0x18] sm:$0x3] }
 0x105   : > { %v538_v1 = vmul.f32 %v1806_v42, %v1919_v49  ;;  %v577_v2 = vmul.f32 %v1814_v46, %v1919_v49  ;;  %v563_v42 = vsel %vm551_vm8, %v561_v7, %v562_v61  ;;  %v602_v46 = vsel %vm590_vm7, %v600_v6, %v601_v9 }
 0x106   : > { %695 = vrot.lane.b32.xlu0 %v686_v28, %s1446_s12  ;;  %v559_v43 = vrot.slane %v540_v34, 1  ;;  %v598_v50 = vrot.slane %v579_v38, 2  ;;  %v662_v59 = vrot.slane %v644_v37, 2  ;;  %v642_v22 = vmul.f32 %v1837_v62, %v1919_v49 }
 0x107   : > { %693 = vrot.lane.b32.xlu2 %v685_v26, %s1446_s12  ;;  %667 = vrot.lane.b32.xlu1 %v657_v29, %s1445_s25  ;;  %v556_v16 = vrot.slane %v538_v1, 1  ;;  %v595_v18 = vrot.slane %v577_v2, 2  ;;  %v571_v25 = vadd.f32 %v563_v42, %v532_v3  ;;  %v666_v26 = vsel %vm590_vm7, %v664_v54, %v665_v33 }
 0x108   : > { %v560_v55 = vsel %vm551_vm8, %v558_v44, %v559_v43  ;;  %v599_v63 = vsel %vm590_vm7, %v597_v41, %v598_v50  ;;  %v663_v20 = vsel %vm590_vm7, %v661_v57, %v662_v59  ;;  %v714_v15 = vmul.f32 %v1877_v23, %v1919_v49 }
 0x109   : > { %v570_v60 = vadd.f32 %v560_v55, %v531_v24  ;;  %v557_v0 = vsel %vm551_vm8, %v555_v13, %v556_v16  ;;  %v596_v24 = vsel %vm590_vm7, %v594_v17, %v595_v18  ;;  %v641_v28 = vmul.f32 %v1837_v62, %v1831_v58 }
 0x10a   : > { %v569_v27 = vadd.f32 %v557_v0, %v1851_v12  ;;  %v1956_v29 = vadd.f32 %v602_v46, %v571_v25  ;;  %v728_v34 = vrot.slane %v1896_v4, 1  ;;  %v713_v33 = vmul.f32 %v1877_v23, %v1831_v58 }
 0x10b   : > { %v1936_v5 = vadd.f32 %v599_v63, %v570_v60  ;;  %v659_v36 = vrot.slane %v642_v22, 2  ;;  %v731_v37 = vrot.slane %v714_v15, 1  ;;  %v658_v38 = vrot.slane %v641_v28, 2 }
 0x10c   : > { %v608_v35 = vadd.f32 %v596_v24, %v569_v27  ;;  %v729_v12 = vsel %vm551_vm8, %v727_v32, %v728_v34  ;;  %v730_v43 = vrot.slane %v713_v33, 1  ;;  %v717_v62 = vmul.f32 %v1877_v23, %v1843_v8 }
 0x10d   : > { %v660_v31 = vsel %vm590_vm7, %v658_v38, %v659_v36  ;;  %v716_v4 = vmul.f32 %v1877_v23, %v1888_v30  ;;  %v758_v50 = vmul.f32 %v756_v39, %v1812_v45  ;;  %v737_v54 = vrot.slane %v718_v47, 1 }
 0x10e   : > { %671 = vrot.lane.b32.xlu0 %v663_v20, %s1445_s25  ;;  %v732_v44 = vsel %vm551_vm8, %v730_v43, %v731_v37  ;;  %v736_v52 = vrot.slane %v717_v62, 1  ;;  %v773_v55 = vrot.slane %v757_v48, 2  ;;  %v733_v56 = vrot.slane %v715_v51, 1 }
 0x10f   : > { %699 = vrot.lane.b32.xlu2 %v688_v21, %s1446_s12  ;;  %673 = vrot.lane.b32.xlu1 %v666_v26, %s1445_s25  ;;  %v734_v53 = vrot.slane %v716_v4, 1  ;;  %v774_v41 = vrot.slane %v758_v50, 2  ;;  %v762_v59 = vmul.f32 %v756_v39, %v1888_v30  ;;  %v760_v45 = vmul.f32 %v756_v39, %v1919_v49 }
 0x110   : > { %v738_v57 = vsel %vm551_vm8, %v736_v52, %v737_v54  ;;  %v761_v23 = vmul.f32 %v756_v39, %v1855_v14  ;;  %v763_v61 = vmul.f32 %v756_v39, %v1843_v8  ;;  %v759_v63 = vmul.f32 %v756_v39, %v1831_v58 }
 0x111   : > { %v735_v40 = vsel %vm551_vm8, %v733_v56, %v734_v53  ;;  %v775_v60 = vsel %vm590_vm7, %v773_v55, %v774_v41  ;;  %v780_v1 = vrot.slane %v762_v59, 2  ;;  %v764_v30 = vmul.f32 %v756_v39, %v1866_v19 }
 0x112   : > { %v777_v2 = vrot.slane %v760_v45, 2  ;;  %v779_v3 = vrot.slane %v761_v23, 2  ;;  %v782_v7 = vrot.slane %v763_v61, 2  ;;  %v776_v6 = vrot.slane %v759_v63, 2 }
 0x113   : > { %v783_v9 = vrot.slane %v764_v30, 2  ;;  %v507_v15 = vstv %s506_s16 }
 0x114   : > { %v781_v49 = vsel %vm590_vm7, %v779_v3, %v780_v1  ;;  %v778_v14 = vsel %vm590_vm7, %v776_v6, %v777_v2  ;;  %v508_v33 = vadd.f32 %v507_v15, %v1771_v11 }
 0x115   : > { %v784_v8 = vsel %vm590_vm7, %v782_v7, %v783_v9 }
 0x116   : > { %739 = vrot.lane.b32.xlu0 %v729_v12, %s1446_s12 }
 0x117   : > { %669 = vrot.lane.b32.xlu2 %v660_v31, %s1445_s25  ;;  %741 = vrot.lane.b32.xlu1 %v732_v44, %s1446_s12 }
 0x11e   : > { %745 = vrot.lane.b32.xlu0 %v738_v57, %s1446_s12 }
 0x11f   : > { %743 = vrot.lane.b32.xlu2 %v735_v40, %s1446_s12  ;;  %785 = vrot.lane.b32.xlu1 %v775_v60, %s1446_s12 }
 0x126   : > { %789 = vrot.lane.b32.xlu0 %v781_v49, %s1446_s12 }
 0x127   : > { %787 = vrot.lane.b32.xlu2 %v778_v14, %s1446_s12  ;;  %791 = vrot.lane.b32.xlu1 %v784_v8, %s1446_s12 }
 0x159   : > { %v626_v58 = vpop.permute.xlu2 %625 }
 0x15a   : > { %v635_v39 = vadd.f32 %v626_v58, %v1936_v5 }
 0x161   : > { %v694_v13 = vpop.permute.xlu2 %693  ;;  %v622_v19 = vpop.permute.xlu0 %621 }
 0x162   : > { %v633_v28 = vadd.f32 %v622_v19, %v1849_v10 }
 0x169   : > { %v624_v16 = vpop.permute.xlu1 %623  ;;  %v700_v17 = vpop.permute.xlu2 %699 }
 0x16a   : > { %v634_v25 = vadd.f32 %v624_v16, %v608_v35 }
 0x170   : > { %v628_v18 = vpop.permute.xlu0 %627 }
 0x171   : > { %v698_v20 = vpop.permute.xlu1 %697  ;;  %v670_v21 = vpop.permute.xlu2 %669  ;;  %v636_v4 = vadd.f32 %v628_v18, %v1956_v29 }
 0x172   : > { %v680_v26 = vadd.f32 %v670_v21, %v634_v25 }
 0x178   : > { %v696_v42 = vpop.permute.xlu0 %695 }
 0x179   : > { %v668_v46 = vpop.permute.xlu1 %667  ;;  %v744_v0 = vpop.permute.xlu2 %743  ;;  %v706_v32 = vadd.f32 %v696_v42, %v680_v26 }
 0x17a   : > { %v679_v36 = vadd.f32 %v668_v46, %v633_v28 }
 0x17c   : > { %v705_v62 = vadd.f32 %v694_v13, %v679_v36 }
 0x180   : > { %v672_v22 = vpop.permute.xlu0 %671 }
 0x181   : > { %v674_v24 = vpop.permute.xlu1 %673  ;;  %v788_v38 = vpop.permute.xlu2 %787  ;;  %v681_v43 = vadd.f32 %v672_v22, %v635_v39 }
 0x182   : > { %v682_v48 = vadd.f32 %v674_v24, %v636_v4 }
 0x183   : > { %v707_v11 = vadd.f32 %v698_v20, %v681_v43 }
 0x184   : > { %v708_v52 = vadd.f32 %v700_v17, %v682_v48 }
 0x185   : > { %v753_v53 = vadd.f32 %v744_v0, %v707_v11 }
 0x188   : > { %v740_v27 = vpop.permute.xlu0 %739 }
 0x189   : > { %v742_v34 = vpop.permute.xlu1 %741  ;;  %v751_v44 = vadd.f32 %v740_v27, %v705_v62 }
 0x18a   : > { %v752_v37 = vadd.f32 %v742_v34, %v706_v32 }
 0x18c   : > { %v798_v12 = vadd.f32 %v788_v38, %v752_v37 }
 0x18e   : > { %v802_v35 = vadd.f32 %v798_v12, %v508_v33 }
 0x190   : > { %v746_v31 = vpop.permute.xlu0 %745  ;;  %v806_v10 = vmax.f32 %v802_v35, 0.0 }
 0x191   : > { %v786_v47 = vpop.permute.xlu1 %785  ;;  %v754_v29 = vadd.f32 %v746_v31, %v708_v52 }
 0x192   : > { %810 = vst.msk [vmem:[%s381_s15 + $0x8] sm:$0xff] %vm498_vm0, %v806_v10  ;;  %v797_v50 = vadd.f32 %v786_v47, %v751_v44 }
 0x194   : > { %v801_v5 = vadd.f32 %v797_v50, %v508_v33 }
 0x196   : > { %v805_v51 = vmax.f32 %v801_v5, 0.0 }
 0x198   : > { %v790_v54 = vpop.permute.xlu0 %789  ;;  %809 = vst.msk [vmem:[%s381_s15] sm:$0xff] %vm498_vm0, %v805_v51 }
 0x199   : > { %v799_v55 = vadd.f32 %v790_v54, %v753_v53  ;;  %v792_v41 = vpop.permute.xlu1 %791 }
 0x19a   : > { %v800_v56 = vadd.f32 %v792_v41, %v754_v29 }
 0x19b   : > { %v803_v57 = vadd.f32 %v799_v55, %v508_v33 }
 0x19c   : > { %v804_v59 = vadd.f32 %v800_v56, %v508_v33 }
 0x19d   : > { %v807_v40 = vmax.f32 %v803_v57, 0.0 }
 0x19e   : > { %v808_v45 = vmax.f32 %v804_v59, 0.0 }
 0x19f   : > { %811 = vst.msk [vmem:[%s381_s15 + $0x10] sm:$0xff] %vm498_vm0, %v807_v40 }
 0x1a0   : > { %812 = vst.msk [vmem:[%s381_s15 + $0x18] sm:$0xff] %vm498_vm0, %v808_v45 }
 0x1a1   : > { %1302 = shalt.err (!%p1299_p7)
}
 0x1a2   : > { %s1447_s2 = smov 128   ;;  %s1448_s12 = smov 256  }
 0x1a3   : > { %s1449_s10 = smov 8  }
 0x1a4   : > { %1023 = dma.vmem_to_hbm [thread:$0]  (%p1682_p3), %s828_s3, 512, %s830_s18, %s814_s13, %s1447_s2, %s1448_s12, %s1449_s10  }
 0x1a5 PF: > { %s2146_s16 = sld [smem:[#allocation19_spill]]  ;;  %p1046_p4 = scmp.ge.s32.totalorder %s1437_s7, 2 }
 0x1a7   : > { %p1040_p2 = pnand %p1046_p4, %p1652_p6 }
 0x1a9   : > { %p1041_p5 = pneg %p1040_p2 }
 0x1ab   : > { %s844_s20 = sand.u32 1, %s2146_s16  }
 0x1ac   : > { %s845_s15 = scalar_lea.sflag [#allocation6], %s844_s20 }
 0x1ad   : > { %1376 = dma.done.wait (%p1041_p5), %s845_s15, 512  }
 0x1ae   : > { %1378 = vsyncadd (%p1041_p5), %s845_s15, 4294966784  ;;  %s26_s7 = sadd.s32 1, %s1437_s7   ;;  %s2149_s28 = sld [smem:[#allocation18_spill]] }
 0x1af   : > { %p2027_p1 = scmp.ge.s32.totalorder %s26_s7, 6   ;;  %s2150_s25 = sld [smem:[#allocation26_spill]] }
 0x1b0   : > { %s2151_s29 = sld [smem:[#allocation20_spill]]  ;;  %s2156_s20 = smov %s1389_s21 }
 0x1b1   : > { %s2152_s27 = sld [smem:[#allocation29_spill]]  ;;  %s2157_s21 = smov %s1393_s22 }
 0x1b2   : > { %s2153_s19 = sld [smem:[#allocation23_spill]]  ;;  %s2158_s22 = smov %s1709_s8 }
 0x1b3   : > { %s2154_s30 = sld [smem:[#allocation24_spill]]  ;;  %s2159_s23 = smov %s1401_s24 }
 0x1b4   : > { %s2155_s5 = sld [smem:[#allocation25_spill]]  ;;  %s2160_s24 = smov %s2149_s28 }
 0x1b5   : > { %s2161_s1 = smov %s1413_s26 }
 0x1b6   : > { %s2162_s26 = smov %s2151_s29  ;;  %s2164_s29 = smov %s1433_s6 }
 0x1b7   :  { %25 = sbr.rel (!%p2027_p1) target bundleno = 20 (0x14), region = 114 }
 0x1b8   : > { %s2163_s28 = smov %s2153_s19 }
 0x1ba   : > { %s2165_s6 = smov %s2155_s5 }
 0x1bc   :  { %851 = vsyncpa [#allocation5], 1 }
 0x1bd   :  { %853 = vsyncpa [#allocation5 + $0x1], 1 }
 0x1be   :  { %854 = vsyncpa [#allocation10], 1 }
 0x1bf   :  { %856 = vsyncpa [#allocation10 + $0x1], 1 }
 0x1c0   :  { %857 = vsyncpa [#allocation6], 1 }
 0x1c1   :  { %859 = vsyncpa [#allocation6 + $0x1], 1 }
 0x1c2   :  { %860 = vsyncpa [#allocation7], 1 }
 0x1c3   :  { %862 = vsyncpa [#allocation7 + $0x1], 1 }

</bundles_post_ra>
